<compile_context>
chip_gen: v5e
topology: v5e:2x2
jax: 0.10.0
libtpu: 0.0.40
codegen_flags: <defaults>
</compile_context>

<pallas_src>
import functools

import jax
import jax.numpy as jnp
from jax.experimental import pallas as pl
from jax.experimental.pallas import tpu as pltpu


def _softplus(x):
    """Numerically stable softplus (no overflow for large positive rho)."""
    return jnp.maximum(x, 0.0) + jnp.log1p(jnp.exp(-jnp.abs(x)))


def _bayes_linear_kernel(x_ref, wmu_ref, wrho_ref, weps_ref,
                         bmu_ref, brho_ref, beps_ref,
                         y_ref, acc_ref, *, mxu_dtype):
    k = pl.program_id(2)          # in_features (reduction) tile index
    nk = pl.num_programs(2)

    @pl.when(k == 0)
    def _():
        acc_ref[...] = jnp.zeros_like(acc_ref)

    # ---- reparameterized weight tile: mu + softplus(rho) * eps  [tn, tk] ----
    w = wmu_ref[...] + _softplus(wrho_ref[...]) * weps_ref[...]
    x = x_ref[...]

    if mxu_dtype is not None:
        # bf16 MXU operands (v6e/v7x bf16-native MXU); f32 accumulation below.
        x = x.astype(mxu_dtype)
        w = w.astype(mxu_dtype)

    # x [tm, tk] . w [tn, tk], contracting the last dim of both -> [tm, tn].
    # No transposed copy of the weight tile is materialized.
    acc_ref[...] += jax.lax.dot_general(
        x, w,
        dimension_numbers=(((1,), (1,)), ((), ())),
        preferred_element_type=jnp.float32)

    # ---- finalize: reparameterize bias once per output tile, add, store ----
    @pl.when(k == nk - 1)
    def _():
        b = bmu_ref[...] + _softplus(brho_ref[...]) * beps_ref[...]   # [1, tn]
        y_ref[...] = (acc_ref[...] + b).astype(y_ref.dtype)


def bayesian_linear_forward(x, weight_mu, weight_rho, bias_mu, bias_rho,
                            eps_w, eps_b, *, tm=None, tn=None, tk=None,
                            mxu_dtype=None):
    """Fused Bayesian linear forward: y = x @ (mu + softplus(rho)*eps_w).T + b.

    eps_w / eps_b are the N(0,1) draws (e.g. from jax.random.normal); the
    caller keeps them, so nothing weight-sized is written back to HBM.
    Set mxu_dtype=jnp.bfloat16 on v6e/v7x for bf16 MXU operands (f32 accum).
    """
    batch, in_features = x.shape
    out_features, in_features_w = weight_mu.shape
    assert in_features_w == in_features
    assert eps_w.shape == (out_features, in_features)
    assert eps_b.shape == (out_features,)

    # ---- tile defaults -------------------------------------------------------
    # Collapse the batch axis (single i block) whenever batch <= 512 so the
    # weight-shaped arrays (mu, rho, eps_w) stream from HBM exactly once.
    if tm is None:
        tm = batch if batch <= 512 else 512
    # Lane-dense, up to 512-wide tiles; keep >= 2 blocks on the parallel j axis
    # when possible so v7x's two TensorCores both get work.
    if tn is None:
        tn = min(out_features, 512)
        if out_features // tn < 2 and out_features % 256 == 0:
            tn = max(out_features // 2, 128)
    if tk is None:
        tk = min(in_features, 512)

    if batch % tm or out_features % tn or in_features % tk:
        raise ValueError(
            f"dims ({batch},{out_features},{in_features}) must be divisible by "
            f"tiles ({tm},{tn},{tk}); pad to multiples of (8,128,128).")
    if (tm % 8 and tm != batch) or (tn % 128 and tn != out_features) or \
       (tk % 128 and tk != in_features):
        raise ValueError(f"tiles ({tm},{tn},{tk}) must be (8,128,128)-aligned "
                         f"or equal to the full dims.")

    bias_mu_2d = bias_mu.reshape(1, out_features)
    bias_rho_2d = bias_rho.reshape(1, out_features)
    eps_b_2d = eps_b.reshape(1, out_features)

    grid = (batch // tm, out_features // tn, in_features // tk)

    # Double-buffered inputs/outputs + f32 accumulator; leave headroom but stay
    # under v7x's 64 MiB physical VMEM.
    est_vmem = 4 * (2 * (tm * tk + 3 * tn * tk + tm * tn + 3 * tn) + tm * tn)
    vmem_limit = min(max(2 * est_vmem, 32 << 20), 60 << 20)

    kernel = functools.partial(_bayes_linear_kernel, mxu_dtype=mxu_dtype)

    y = pl.pallas_call(
        kernel,
        out_shape=jax.ShapeDtypeStruct((batch, out_features), x.dtype),
        grid_spec=pltpu.PrefetchScalarGridSpec(
            num_scalar_prefetch=0,
            grid=grid,
            in_specs=[
                pl.BlockSpec((tm, tk), lambda i, j, k: (i, k)),   # x
                pl.BlockSpec((tn, tk), lambda i, j, k: (j, k)),   # weight_mu
                pl.BlockSpec((tn, tk), lambda i, j, k: (j, k)),   # weight_rho
                pl.BlockSpec((tn, tk), lambda i, j, k: (j, k)),   # eps_w
                pl.BlockSpec((1, tn), lambda i, j, k: (0, j)),    # bias_mu
                pl.BlockSpec((1, tn), lambda i, j, k: (0, j)),    # bias_rho
                pl.BlockSpec((1, tn), lambda i, j, k: (0, j)),    # eps_b
            ],
            out_specs=pl.BlockSpec((tm, tn), lambda i, j, k: (i, j)),   # y
            scratch_shapes=[pltpu.VMEM((tm, tn), jnp.float32)],
        ),
        compiler_params=pltpu.CompilerParams(
            dimension_semantics=("parallel", "parallel", "arbitrary"),
            vmem_limit_bytes=vmem_limit),
    )(x, weight_mu, weight_rho, eps_w, bias_mu_2d, bias_rho_2d, eps_b_2d)

    return y


def kl_loss(weight_mu, weight_rho, bias_mu, bias_rho, prior_std=1.0):
    """KL(q || N(0, prior_std^2)) over all parameters (pure JAX, host-side)."""
    def _kl(mu, rho):
        sigma = _softplus(rho)
        return jnp.sum(jnp.log(prior_std) - jnp.log(sigma)
                       + (sigma ** 2 + mu ** 2) / (2.0 * prior_std ** 2) - 0.5)
    return _kl(weight_mu, weight_rho) + _kl(bias_mu, bias_rho)


def _reference_forward(x, weight_mu, weight_rho, bias_mu, bias_rho,
                       eps_w, eps_b, mxu_dtype=None):
    """Pure-JAX reference mirroring the PyTorch forward, given the eps draws."""
    w = weight_mu + _softplus(weight_rho) * eps_w
    b = bias_mu + _softplus(bias_rho) * eps_b
    xx = x if mxu_dtype is None else x.astype(mxu_dtype)
    ww = w if mxu_dtype is None else w.astype(mxu_dtype)
    y = jax.lax.dot_general(
        xx, ww, dimension_numbers=(((1,), (1,)), ((), ())),
        precision=jax.lax.Precision.HIGHEST,
        preferred_element_type=jnp.float32)
    return y + b


if __name__ == "__main__":
    # Small but TPU-friendly shapes: lane-dense in/out dims (multiples of 128),
    # batch a multiple of 8.  Explicit tiles give grid (1, 2, 2) so the
    # K-accumulation path and the 2-block parallel j axis are exercised.
    in_features = 256
    out_features = 256
    batch = 32

    root = jax.random.PRNGKey(0)
    k_init, k_x, k_ew, k_eb = jax.random.split(root, 4)

    # Matches BayesianLayer.reset_parameters():
    #   weight_mu ~ kaiming_normal_ (fan_in): std = sqrt(2 / in_features)
    #   weight_rho = -3, bias_mu = 0, bias_rho = -3
    kaiming_std = (2.0 / in_features) ** 0.5
    weight_mu = kaiming_std * jax.random.normal(
        k_init, (out_features, in_features), dtype=jnp.float32)
    weight_rho = jnp.full((out_features, in_features), -3.0, dtype=jnp.float32)
    bias_mu = jnp.zeros((out_features,), dtype=jnp.float32)
    bias_rho = jnp.full((out_features,), -3.0, dtype=jnp.float32)

    x = jax.random.normal(k_x, (batch, in_features), dtype=jnp.float32)

    # Reparameterization noise (torch.randn_like equivalent), drawn outside the
    # kernel so the exact same eps can be reused by the backward / KL path.
    eps_w = jax.random.normal(k_ew, (out_features, in_features), jnp.float32)
    eps_b = jax.random.normal(k_eb, (out_features,), jnp.float32)

    # --- f32 MXU-operand path (default) --------------------------------------
    y = bayesian_linear_forward(
        x, weight_mu, weight_rho, bias_mu, bias_rho, eps_w, eps_b,
        tm=32, tn=128, tk=128)
    y = jax.block_until_ready(y)

    y_ref = _reference_forward(
        x, weight_mu, weight_rho, bias_mu, bias_rho, eps_w, eps_b)

    assert y.shape == (batch, out_features)
    assert bool(jnp.all(jnp.isfinite(y))), "non-finite output"
    assert jnp.allclose(y, y_ref, atol=1e-3, rtol=1e-3), "f32 mismatch vs reference"

    # --- bf16 MXU-operand path (v6e/v7x), f32 accumulation --------------------
    y_bf16 = bayesian_linear_forward(
        x, weight_mu, weight_rho, bias_mu, bias_rho, eps_w, eps_b,
        mxu_dtype=jnp.bfloat16)
    y_bf16 = jax.block_until_ready(y_bf16)
    assert jnp.allclose(y_bf16, y_ref, atol=5e-2, rtol=5e-2), "bf16 mismatch vs reference"

    print("KERNEL_OK")
</pallas_src>

<mosaic_0001>
module attributes {stable_mosaic.version = 11 : i64} {
  func.func @_bayes_linear_kernel(%arg0: i32, %arg1: i32, %arg2: i32, %arg3: memref<32x128xf32, #tpu.memory_space<vmem>>, %arg4: memref<128x128xf32, #tpu.memory_space<vmem>>, %arg5: memref<128x128xf32, #tpu.memory_space<vmem>>, %arg6: memref<128x128xf32, #tpu.memory_space<vmem>>, %arg7: memref<1x128xf32, #tpu.memory_space<vmem>>, %arg8: memref<1x128xf32, #tpu.memory_space<vmem>>, %arg9: memref<1x128xf32, #tpu.memory_space<vmem>>, %arg10: memref<32x128xf32, #tpu.memory_space<vmem>>, %arg11: memref<32x128xf32, #tpu.memory_space<vmem>>) attributes {dimension_semantics = [#tpu.dimension_semantics<parallel>, #tpu.dimension_semantics<parallel>, #tpu.dimension_semantics<arbitrary>], iteration_bounds = array<i64: 1, 2, 2>, scalar_prefetch = 0 : i64, scratch_operands = 1 : i64, tpu.core_type = #tpu.core_type<tc>, window_params = [{transform_indices = @transform_0, window_bounds = array<i64: 32, 128>}, {transform_indices = @transform_1, window_bounds = array<i64: 128, 128>}, {transform_indices = @transform_2, window_bounds = array<i64: 128, 128>}, {transform_indices = @transform_3, window_bounds = array<i64: 128, 128>}, {transform_indices = @transform_4, window_bounds = array<i64: 1, 128>}, {transform_indices = @transform_5, window_bounds = array<i64: 1, 128>}, {transform_indices = @transform_6, window_bounds = array<i64: 1, 128>}, {transform_indices = @transform_7, window_bounds = array<i64: 32, 128>}]} {
    %c0_i32 = arith.constant 0 : i32
    %0 = arith.cmpi eq, %arg2, %c0_i32 : i32
    %1 = arith.extui %0 : i1 to i32
    %c0_i32_0 = arith.constant 0 : i32
    %2 = arith.cmpi ne, %1, %c0_i32_0 : i32
    scf.if %2 {
      %cst_15 = arith.constant 0.000000e+00 : f32
      %24 = vector.broadcast %cst_15 : f32 to vector<32x128xf32>
      %c0_16 = arith.constant 0 : index
      %c0_17 = arith.constant 0 : index
      %25 = vector.load %arg11[%c0_16, %c0_17] : memref<32x128xf32, #tpu.memory_space<vmem>>, vector<32x128xf32>
      tpu.vector_store %arg11[%c0_16, %c0_17], %24 {strides = array<i32>} : memref<32x128xf32, #tpu.memory_space<vmem>>, vector<32x128xf32>,
    } else {
    }
    %c0 = arith.constant 0 : index
    %c0_1 = arith.constant 0 : index
    %3 = vector.load %arg4[%c0, %c0_1] : memref<128x128xf32, #tpu.memory_space<vmem>>, vector<128x128xf32>
    %c0_2 = arith.constant 0 : index
    %c0_3 = arith.constant 0 : index
    %4 = vector.load %arg5[%c0_2, %c0_3] : memref<128x128xf32, #tpu.memory_space<vmem>>, vector<128x128xf32>
    %cst = arith.constant 0.000000e+00 : f32
    %5 = vector.broadcast %cst : f32 to vector<128x128xf32>
    %6 = arith.maximumf %4, %5 : vector<128x128xf32>
    %7 = math.absf %4 : vector<128x128xf32>
    %cst_4 = arith.constant 0.000000e+00 : f32
    %8 = vector.broadcast %cst_4 : f32 to vector<128x128xf32>
    %9 = arith.subf %8, %7 : vector<128x128xf32>
    %10 = math.exp %9 : vector<128x128xf32>
    %11 = math.log1p %10 : vector<128x128xf32>
    %12 = arith.addf %6, %11 : vector<128x128xf32>
    %c0_5 = arith.constant 0 : index
    %c0_6 = arith.constant 0 : index
    %13 = vector.load %arg6[%c0_5, %c0_6] : memref<128x128xf32, #tpu.memory_space<vmem>>, vector<128x128xf32>
    %14 = arith.mulf %12, %13 : vector<128x128xf32>
    %15 = arith.addf %3, %14 : vector<128x128xf32>
    %c0_7 = arith.constant 0 : index
    %c0_8 = arith.constant 0 : index
    %16 = vector.load %arg3[%c0_7, %c0_8] : memref<32x128xf32, #tpu.memory_space<vmem>>, vector<32x128xf32>
    %c0_9 = arith.constant 0 : index
    %c0_10 = arith.constant 0 : index
    %17 = vector.load %arg11[%c0_9, %c0_10] : memref<32x128xf32, #tpu.memory_space<vmem>>, vector<32x128xf32>
    %cst_11 = arith.constant dense<0.000000e+00> : vector<32x128xf32>
    %18 = tpu.matmul %16, %15, %cst_11 {dimension_numbers = #tpu.dot_dimension_numbers<[1], [1], [0], [0], [0, 0, 1, 0], [], []>} : vector<32x128xf32>, vector<128x128xf32>, vector<32x128xf32> -> vector<32x128xf32>
    %19 = arith.addf %17, %18 : vector<32x128xf32>
    %c0_12 = arith.constant 0 : index
    %c0_13 = arith.constant 0 : index
    %20 = vector.load %arg11[%c0_12, %c0_13] : memref<32x128xf32, #tpu.memory_space<vmem>>, vector<32x128xf32>
    tpu.vector_store %arg11[%c0_12, %c0_13], %19 {strides = array<i32>} : memref<32x128xf32, #tpu.memory_space<vmem>>, vector<32x128xf32>,
    %c1_i32 = arith.constant 1 : i32
    %21 = arith.cmpi eq, %arg2, %c1_i32 : i32
    %22 = arith.extui %21 : i1 to i32
    %c0_i32_14 = arith.constant 0 : i32
    %23 = arith.cmpi ne, %22, %c0_i32_14 : i32
    scf.if %23 {
      %c0_15 = arith.constant 0 : index
      %c0_16 = arith.constant 0 : index
      %24 = vector.load %arg7[%c0_15, %c0_16] : memref<1x128xf32, #tpu.memory_space<vmem>>, vector<1x128xf32>
      %c0_17 = arith.constant 0 : index
      %c0_18 = arith.constant 0 : index
      %25 = vector.load %arg8[%c0_17, %c0_18] : memref<1x128xf32, #tpu.memory_space<vmem>>, vector<1x128xf32>
      %cst_19 = arith.constant 0.000000e+00 : f32
      %26 = vector.broadcast %cst_19 : f32 to vector<1x128xf32>
      %27 = arith.maximumf %25, %26 : vector<1x128xf32>
      %28 = math.absf %25 : vector<1x128xf32>
      %cst_20 = arith.constant 0.000000e+00 : f32
      %29 = vector.broadcast %cst_20 : f32 to vector<1x128xf32>
      %30 = arith.subf %29, %28 : vector<1x128xf32>
      %31 = math.exp %30 : vector<1x128xf32>
      %32 = math.log1p %31 : vector<1x128xf32>
      %33 = arith.addf %27, %32 : vector<1x128xf32>
      %c0_21 = arith.constant 0 : index
      %c0_22 = arith.constant 0 : index
      %34 = vector.load %arg9[%c0_21, %c0_22] : memref<1x128xf32, #tpu.memory_space<vmem>>, vector<1x128xf32>
      %35 = arith.mulf %33, %34 : vector<1x128xf32>
      %36 = arith.addf %24, %35 : vector<1x128xf32>
      %c0_23 = arith.constant 0 : index
      %c0_24 = arith.constant 0 : index
      %37 = vector.load %arg11[%c0_23, %c0_24] : memref<32x128xf32, #tpu.memory_space<vmem>>, vector<32x128xf32>
      %38 = vector.broadcast %36 : vector<1x128xf32> to vector<32x128xf32>
      %39 = arith.addf %37, %38 : vector<32x128xf32>
      %c0_25 = arith.constant 0 : index
      %c0_26 = arith.constant 0 : index
      %40 = vector.load %arg10[%c0_25, %c0_26] : memref<32x128xf32, #tpu.memory_space<vmem>>, vector<32x128xf32>
      tpu.vector_store %arg10[%c0_25, %c0_26], %39 {strides = array<i32>} : memref<32x128xf32, #tpu.memory_space<vmem>>, vector<32x128xf32>,
    } else {
    }
    return
  }
  func.func @transform_0(%arg0: i32, %arg1: i32, %arg2: i32) -> (i32, i32) {
    %c0_i32 = arith.constant 0 : i32
    return %arg0, %arg2 : i32, i32
  }
  func.func @transform_1(%arg0: i32, %arg1: i32, %arg2: i32) -> (i32, i32) {
    %c0_i32 = arith.constant 0 : i32
    return %arg1, %arg2 : i32, i32
  }
  func.func @transform_2(%arg0: i32, %arg1: i32, %arg2: i32) -> (i32, i32) {
    %c0_i32 = arith.constant 0 : i32
    return %arg1, %arg2 : i32, i32
  }
  func.func @transform_3(%arg0: i32, %arg1: i32, %arg2: i32) -> (i32, i32) {
    %c0_i32 = arith.constant 0 : i32
    return %arg1, %arg2 : i32, i32
  }
  func.func @transform_4(%arg0: i32, %arg1: i32, %arg2: i32) -> (i32, i32) {
    %c0_i32 = arith.constant 0 : i32
    %c0_i32_0 = arith.constant 0 : i32
    return %c0_i32, %arg1 : i32, i32
  }
  func.func @transform_5(%arg0: i32, %arg1: i32, %arg2: i32) -> (i32, i32) {
    %c0_i32 = arith.constant 0 : i32
    %c0_i32_0 = arith.constant 0 : i32
    return %c0_i32, %arg1 : i32, i32
  }
  func.func @transform_6(%arg0: i32, %arg1: i32, %arg2: i32) -> (i32, i32) {
    %c0_i32 = arith.constant 0 : i32
    %c0_i32_0 = arith.constant 0 : i32
    return %c0_i32, %arg1 : i32, i32
  }
  func.func @transform_7(%arg0: i32, %arg1: i32, %arg2: i32) -> (i32, i32) {
    %c0_i32 = arith.constant 0 : i32
    return %arg0, %arg1 : i32, i32
  }
}

</mosaic_0001>

<bundles_post_ra>
// kernel: tpu_custom_call.1
= control target key start
LH: loop header
LB: loop body
LE: loop exit
PB: predicated region body
PF: predicated region fallthrough
CT: control target
= control target key end

     0   :  { %s2461_s0 = inlined_call_operand.hbm [shape: f32[32,256], index: 0, kind: input, shape index: {}]   ;;  %s2462_s1 = inlined_call_operand.hbm [shape: f32[256,256], index: 1, kind: input, shape index: {}]   ;;  %s2463_s2 = inlined_call_operand.hbm [shape: f32[256,256], index: 2, kind: input, shape index: {}]   ;;  %s2464_s3 = inlined_call_operand.hbm [shape: f32[256,256], index: 3, kind: input, shape index: {}]   ;;  %s2465_s4 = inlined_call_operand.vmem [shape: f32[1,256], index: 4, kind: input, shape index: {}]   ;;  %s2466_s5 = inlined_call_operand.vmem [shape: f32[1,256], index: 5, kind: input, shape index: {}]   ;;  %s2467_s6 = inlined_call_operand.hbm [shape: f32[1,256], index: 6, kind: input, shape index: {}]   ;;  %s2468_s7 = inlined_call_operand.hbm [shape: f32[32,256], index: 7, kind: output, shape index: {}]  }
   0x1   :  { %2482 = sst [smem:[#allocation27_spill]] %s2461_s0 }
   0x2   :  { %2483 = sst [smem:[#allocation28_spill]] %s2462_s1 }
   0x3   :  { %2484 = sst [smem:[#allocation29_spill]] %s2464_s3 }
   0x4   :  { %2485 = sst [smem:[#allocation30_spill]] %s2465_s4 }
   0x5   :  { %2486 = sst [smem:[#allocation31_spill]] %s2466_s5 }
   0x6   :  { %2487 = sst [smem:[#allocation32_spill]] %s2467_s6 }
   0x7   :  { %2488 = sst [smem:[#allocation33_spill]] %s2468_s7 }
   0x8   :  { %12 = vsyncpa [#allocation4], 0 }
   0x9   :  { %14 = vsyncpa [#allocation4 + $0x1], 0 }
   0xa   :  { %15 = vsyncpa [#allocation7], 0 }
   0xb   :  { %17 = vsyncpa [#allocation7 + $0x1], 0 }
   0xc   :  { %18 = vsyncpa [#allocation10], 0 }
   0xd   :  { %20 = vsyncpa [#allocation10 + $0x1], 0 }
   0xe   :  { %21 = vsyncpa [#allocation5], 0 }
   0xf   :  { %23 = vsyncpa [#allocation5 + $0x1], 0  ;;  %s1810_s24 = smov 0   ;;  %s1812_s25 = smov 0  }
  0x10   :  { %s1814_s26 = smov 0   ;;  %s1816_s27 = smov 0  }
  0x11   :  { %s1818_s28 = smov 0   ;;  %s1820_s29 = smov 0  }
  0x12   :  { %s1822_s30 = smov 0   ;;  %s1824_s8 = smov 0  }
  0x13   :  { %s1826_s9 = smov 0   ;;  %s1828_s10 = smov 0  }
  0x14   :  { %s1830_s11 = smov 0   ;;  %s1832_s12 = smov 0  }
  0x15   :  { %s1834_s13 = smov 0   ;;  %s1836_s14 = smov 0  }
  0x16 LB: > { %2489 = sst [smem:[#allocation18_spill]] %s1709_s24  ;;  %s41_s15 = sadd.s32 1, %s1753_s12  ;;  %s1761_s14 = sphi %s1836_s14, %s29_s14   ;;  %s1757_s13 = sphi %s1834_s13, %s2575_s13   ;;  %s1753_s12 = sphi %s1832_s12, %s2565_s12   ;;  %s1749_s11 = sphi %s1830_s11, %s2574_s11   ;;  %s1745_s10 = sphi %s1828_s10, %s2564_s10   ;;  %s1741_s9 = sphi %s1826_s9, %s2573_s9   ;;  %s1737_s8 = sphi %s1824_s8, %s2572_s8   ;;  %s1733_s30 = sphi %s1822_s30, %s2571_s30   ;;  %s1729_s29 = sphi %s1820_s29, %s2570_s29   ;;  %s1725_s28 = sphi %s1818_s28, %s2562_s28   ;;  %s1721_s27 = sphi %s1816_s27, %s2569_s27   ;;  %s1717_s26 = sphi %s1814_s26, %s2568_s26   ;;  %s1713_s25 = sphi %s1812_s25, %s2567_s25   ;;  %s1709_s24 = sphi %s1810_s24, %s2566_s24  }
  0x17   : > { %2490 = sst [smem:[#allocation19_spill]] %s1721_s27  ;;  %p65_p0 = scmp.eq.s32.totalorder %s1761_s14, 0 }
  0x18   : > { %2491 = sst [smem:[#allocation20_spill]] %s1725_s28  ;;  %p1882_p1 = scmp.ge.s32.totalorder %s41_s15, 2 }
  0x19   : > { %2492 = sst [smem:[#allocation21_spill]] %s1729_s29  ;;  %p92_p2 = scmp.ne.s32.totalorder %s1729_s29, %s1725_s28 }
  0x1a   : > { %2493 = sst [smem:[#allocation22_spill]] %s1745_s10  ;;  %p98_p3 = scmp.ne.s32.totalorder %s1725_s28, %s1721_s27 }
  0x1b   : > { %2494 = sst [smem:[#allocation23_spill]] %s1749_s11  ;;  %s2577_s15 = smov (%p1882_p1, %s41_s15), 0 }
  0x1c   : > { %2495 = sst [smem:[#allocation24_spill]] %s1753_s12  ;;  %p1897_p4 = por %p92_p2, %p65_p0 }
  0x1d   : > { %2497 = sst [smem:[#allocation25_spill]] %s2577_s15  ;;  %s1903_s19 = ssub.s32 %s1753_s12, %s2577_s15 }
  0x1e   : > { %p1264_p5 = scmp.lt.s32.totalorder %s1761_s14, 4  ;;  %p55_p6 = scmp.eq.s32.totalorder %s1903_s19, 0 }
  0x1f   : > { %s308_s20 = sand.u32 1, %s1761_s14   ;;  %s310_s21 = sand.u32 1, %s1729_s29  }
  0x20   : > { %s1909_s22 = sshll.u32 %s310_s21, 7  ;;  %s1181_s23 = sshll.u32 %s1757_s13, 5 }
  0x21   : > { %s317_s17 = sadd.s32 %s1753_s12, %s1181_s23  ;;  %s312_s7 = scalar_lea.vmem [#allocation6], %s1909_s22 }
  0x22   : > { %s322_s10 = sshll.u32 %s312_s7, 4  ;;  %s1914_s5 = sshll.u32 %s317_s17, 3  ;;  %s323_s10 = int_to_ptr.vmem [resolvable:$true] %s322_s10 }
  0x23   : > { %s2499_s1 = sld [smem:[#allocation28_spill]]  ;;  %p1924_p7 = pnand %p1264_p5, %p1897_p4 }
  0x24   : > { %p1169_p8 = scmp.ge.s32.totalorder %s1761_s14, 1  ;;  %s1929_s7 = scalar_lea.sflag [#allocation7], %s308_s20 }
  0x25   : > { %s2477_s4 = smov 256   ;;  %s2479_s15 = smov 128  }
  0x26   : > { %s1765_s17 = smov 8   ;;  %p407_p9 = scmp.lt.s32.totalorder %s1761_s14, 5 }
  0x27   : > { %s2501_s3 = sld [smem:[#allocation29_spill]]  ;;  %s360_s24 = scalar_lea.vmem [#allocation9], %s1909_s22 }
  0x28   : > { %p1942_p10 = pnand %p1169_p8, %p407_p9  ;;  %s370_s27 = sshll.u32 %s360_s24, 4  ;;  %s371_s27 = int_to_ptr.vmem [resolvable:$true] %s370_s27 }
  0x29   : > { %s319_s11 = scalar_lea.hbm %s2499_s1, %s1914_s5  ;;  %s1947_s28 = scalar_lea.sflag [#allocation10], %s308_s20 }
  0x2a   : > { %s320_s23 = sshll.u32 %s319_s11, 4  ;;  %p64_p11 = scmp.ne.s32.totalorder %s1741_s9, %s1737_s8  ;;  %s321_s23 = int_to_ptr.hbm [resolvable:$true] %s320_s23 }
  0x2b   : > { %1250 = dma.hbm_to_vmem [thread:$0]  (!%p1924_p7), %s321_s23, 2048, %s323_s10, %s1929_s7, %s2477_s4, %s2479_s15, %s1765_s17  }
  0x2c   : > { %s57_s10 = sadd.s32 1, %s1741_s9  ;;  %p70_p12 = scmp.ne.s32.totalorder %s1737_s8, %s1733_s30 }
  0x2d   : > { %s367_s1 = scalar_lea.hbm %s2501_s3, %s1914_s5  ;;  %s1156_s24 = sshll.u32 %s1753_s12, 3 }
  0x2e   : > { %s368_s29 = sshll.u32 %s367_s1, 4  ;;  %s284_s1 = sand.u32 1, %s1741_s9   ;;  %s369_s29 = int_to_ptr.hbm [resolvable:$true] %s368_s29 }
  0x2f   : > { %1256 = dma.hbm_to_vmem [thread:$0]  (!%p1924_p7), %s369_s29, 2048, %s371_s27, %s1947_s28, %s2477_s4, %s2479_s15, %s1765_s17  }
  0x30   : > { %s1959_s23 = scalar_select %p55_p6, %s1741_s9, %s57_s10  }
  0x31   : > { %p66_p13 = por %p65_p0, %p64_p11  ;;  %s1155_s20 = sshll.u32 %s284_s1, 5 }
  0x32   : > { %2503 = sst [smem:[#allocation26_spill]] %s1959_s23  ;;  %s288_s29 = scalar_lea.vmem [#allocation3], %s1155_s20 }
  0x33   : > { %s2504_s0 = sld [smem:[#allocation27_spill]]  ;;  %s298_s10 = sshll.u32 %s288_s29, 4  ;;  %s299_s10 = int_to_ptr.vmem [resolvable:$true] %s298_s10 }
  0x34   : > { %p1245_p2 = pnand %p1264_p5, %p66_p13  ;;  %s343_s11 = scalar_lea.hbm %s2463_s2, %s1914_s5 }
  0x35   : > { %s2505_s18 = smov 128   ;;  %s2506_s20 = smov 256  }
  0x36   : > { %s336_s29 = scalar_lea.vmem [#allocation8], %s1909_s22  ;;  %s2509_s23 = sld [smem:[#allocation18_spill]] }
  0x37   : > { %s346_s5 = sshll.u32 %s336_s29, 4  ;;  %s1989_s4 = sadd.s32 4294967295, %s1761_s14   ;;  %s347_s5 = int_to_ptr.vmem [resolvable:$true] %s346_s5 }
  0x38   : > { %s1152_s15 = sadd.s32 4294967294, %s1761_s14   ;;  %p71_p4 = scmp.eq.s32.totalorder %s1989_s4, 0 }
  0x39   : > { %s295_s3 = scalar_lea.hbm %s2504_s0, %s1156_s24  ;;  %s344_s24 = sshll.u32 %s343_s11, 4  ;;  %s345_s24 = int_to_ptr.hbm [resolvable:$true] %s344_s24 }
  0x3a   : > { %s296_s27 = sshll.u32 %s295_s3, 4  ;;  %s285_s3 = scalar_lea.sflag [#allocation4], %s284_s1  ;;  %s297_s27 = int_to_ptr.hbm [resolvable:$true] %s296_s27 }
  0x3b   : > { %1247 = dma.hbm_to_vmem [thread:$0]  (!%p1245_p2), %s297_s27, 512, %s299_s10, %s285_s3, %s2506_s20, %s2505_s18, %s1765_s17  }
  0x3c   : > { %1253 = dma.hbm_to_vmem [thread:$0]  (!%p1924_p7), %s345_s24, 2048, %s347_s5, %s1929_s7, %s2506_s20, %s2505_s18, %s1765_s17  }
  0x3d   : > { %s44_s1 = sadd.s32 1, %s1757_s13  ;;  %s2510_s22 = sld [smem:[#allocation21_spill]] }
  0x3e   : > { %s2579_s1 = smov (!%p1882_p1, %s44_s1), %s1757_s13  ;;  %s219_s21 = sadd.s32 1, %s1717_s26 }
  0x3f   : > { %p46_p6 = scmp.ge.s32.totalorder %s2579_s1, 2  ;;  %p226_p7 = scmp.ne.s32.totalorder %s1717_s26, %s1713_s25 }
  0x40   : > { %p2005_p8 = por %p71_p4, %p70_p12  ;;  %p2014_p1 = por %p98_p3, %p71_p4 }
  0x41   : > { %s2581_s1 = smov (%p46_p6, %s2579_s1), 0  ;;  %p2025_p9 = por %p226_p7, %p65_p0 }
  0x42   : > { %p232_p11 = scmp.ne.s32.totalorder %s1713_s25, %s2509_s23  ;;  %s80_s17 = ssub.s32 %s1757_s13, %s2581_s1 }
  0x43   : > { %p258_p12 = scmp.eq.s32.totalorder %s1989_s4, 3  ;;  %s82_s0 = sor.u32 %s80_s17, %s1903_s19 }
  0x44   : > { %p217_p3 = scmp.eq.s32.totalorder %s80_s17, 0  ;;  %p83_p13 = scmp.eq.s32.totalorder %s82_s0, 0 }
  0x45   : > { %p2040_p2 = por %p232_p11, %p71_p4  ;;  %s2515_s10 = sadd.s32 1, %s2510_s22 }
  0x46   : > { %s2045_s27 = scalar_select %p217_p3, %s1717_s26, %s219_s21  }
  0x47   : > { %s2583_s22 = smov (!%p83_p13, %s2510_s22), %s2515_s10  ;;  %p2055_p0 = por %p258_p12, %p226_p7 }
  0x48   : > { %p264_p6 = scmp.eq.s32.totalorder %s1152_s15, 3  ;;  %s394_s19 = sand.u32 1, %s1717_s26  }
  0x49   : > { %s2517_s18 = sld [smem:[#allocation32_spill]]  ;;  %s395_s21 = scalar_lea.vmem [#allocation11], %s394_s19 }
  0x4a   : > { %p2067_p4 = por %p264_p6, %p232_p11  ;;  %s402_s17 = sshll.u32 %s395_s21, 4  ;;  %s403_s17 = int_to_ptr.vmem [resolvable:$true] %s402_s17 }
  0x4b   : > { %p1257_p7 = pnand %p1264_p5, %p2025_p9  ;;  %s413_s15 = sand.u32 (!%p1942_p10), 1, %s1737_s8  }
  0x4c   : > { %s1170_s23 = sshll.u32 (!%p1942_p10), %s413_s15, 5  ;;  %s414_s0 = scalar_lea.sflag (!%p1942_p10), [#allocation4], %s413_s15 }
  0x4d   : > { %411 = sbr.rel (%p1942_p10) target bundleno = 415 (0x19f), region = 48  ;;  %s2079_s10 = scalar_lea.vmem (!%p1942_p10), [#allocation3], %s1170_s23 }
  0x4f   : > { %s398_s20 = scalar_lea.hbm %s2517_s18, %s1757_s13 }
  0x50   : > { %s400_s5 = sshll.u32 %s398_s20, 4  ;;  %s401_s5 = int_to_ptr.hbm [resolvable:$true] %s400_s5 }
  0x51   : > { %1259 = dma.hbm_to_vmem [thread:$0]  (!%p1257_p7), %s401_s5, 16, %s403_s17, %s1947_s28  }
  0x52   : > { %1688 = dma.done.wait (%p2005_p8), %s414_s0, 512  }
  0x53   : > { %1690 = vsyncadd (%p2005_p8), %s414_s0, 4294966784  ;;  %s2519_s30 = sld [smem:[#allocation20_spill]]  ;;  %s423_s19 = sand.u32 1, %s1989_s4  }
  0x54   : > { %s424_s6 = scalar_lea.sflag [#allocation7], %s423_s19 }
  0x59   : > { %s425_s28 = sand.u32 1, %s2519_s30  }
  0x5a   : > { %s1171_s24 = sshll.u32 %s425_s28, 7 }
  0x5b   : > { %s2087_s3 = scalar_lea.vmem [#allocation6], %s1171_s24 }
  0x5c   : > { %1692 = dma.done.wait (%p2014_p1), %s424_s6, 4096  }
  0x5d   : > { %1694 = vsyncadd (%p2014_p1), %s424_s6, 4294963200  ;;  %s2093_s18 = scalar_lea.vmem [#allocation8], %s1171_s24  ;;  %s444_s20 = scalar_lea.sflag [#allocation10], %s423_s19 }
  0x5e   : > { %s2095_s7 = scalar_lea.vmem [#allocation9], %s1171_s24 }
  0x5f   : > { %1696 = dma.done.wait (%p2014_p1), %s444_s20, 2048  }
  0x60   : > { %1698 = vsyncadd (%p2014_p1), %s444_s20, 4294965248  ;;  %s2102_s4 = sand.u32 1, %s1713_s25  }
  0x61   : > { %s456_s5 = scalar_lea.vmem [#allocation11], %s2102_s4 }
  0x62   : > { %1700 = dma.done.wait (%p2040_p2), %s444_s20, 16  }
  0x63   : > { %1702 = vsyncadd (%p2040_p2), %s444_s20, 4294967280  ;;  %s2520_s21 = sld [smem:[#allocation23_spill]]  ;;  %s1174_s17 = sshll.u32 %s2102_s4, 5 }
  0x64   : > { %s2521_s23 = sld [smem:[#allocation30_spill]]  ;;  %s2122_s6 = scalar_lea.vmem [#allocation12], %s1174_s17 }
  0x65   : > { %s2522_s28 = sld [smem:[#allocation31_spill]] }
  0x66   : > { %s2523_s12 = sld [smem:[#allocation22_spill]] }
  0x69   : > { %p517_p5 = scmp.lt.s32.totalorder %s2520_s21, 1 }
  0x6b   : > { %s2585_s21 = smov (!%p517_p5, %s2520_s21), 1 }
  0x6c   : > { %s519_s0 = scalar_lea.vmem %s2521_s23, %s2585_s21  ;;  %s522_s24 = scalar_lea.vmem %s2522_s28, %s2585_s21 }
  0x6d   : > { %p1175_p10 = scmp.ne.s32.totalorder %s2523_s12, 0 }
  0x6f   : > { %527 = sbr.rel (%p1175_p10) target bundleno = 121 (0x79), region = 72 }
  0x74   : > { %v1766_v0 = vmov 0.0  }
  0x75   : > { %528 = vst [vmem:[#allocation2 + $0x10] sm:$0xff] %v1766_v0 }
  0x76   : > { %529 = vst [vmem:[#allocation2] sm:$0xff] %v1766_v0 }
  0x77   : > { %530 = vst [vmem:[#allocation2 + $0x18] sm:$0xff] %v1766_v0 }
  0x78   : > { %531 = vst [vmem:[#allocation2 + $0x8] sm:$0xff] %v1766_v0 }
  0x79 PF: > { %v2126_v1 = vld [vmem:[%s2093_s18 + $0x78] sm:$0xff]  ;;  %v2130_v3 = vld [vmem:[%s2093_s18 + $0x70] sm:$0xff]  ;;  %v2134_v5 = vld [vmem:[%s2093_s18 + $0x68] sm:$0xff] }
  0x7a   : > { %v595_v2 = vand.u32 2147483647, %v2126_v1  ;;  %v594_v4 = vand.u32 2147483647, %v2130_v3  ;;  %v2137_v6 = vld [vmem:[%s2093_s18 + $0x60] sm:$0xff]  ;;  %v2140_v7 = vld [vmem:[%s2093_s18 + $0x58] sm:$0xff] }
  0x7b   : > { %v593_v9 = vand.u32 2147483647, %v2134_v5  ;;  %v2144_v10 = vld [vmem:[%s2093_s18 + $0x50] sm:$0xff]  ;;  %v592_v12 = vand.u32 2147483647, %v2137_v6  ;;  %v2148_v13 = vld [vmem:[%s2093_s18 + $0x48] sm:$0xff] }
  0x7c   : > { %v611_v8 = vsub.f32 0.0, %v595_v2  ;;  %v610_v11 = vsub.f32 0.0, %v594_v4  ;;  %v591_v16 = vand.u32 2147483647, %v2140_v7  ;;  %v590_v19 = vand.u32 2147483647, %v2144_v10 }
  0x7d   : > { %v609_v15 = vsub.f32 0.0, %v593_v9  ;;  %v608_v18 = vsub.f32 0.0, %v592_v12  ;;  %v2153_v20 = vld [vmem:[%s2093_s18 + $0x40] sm:$0xff]  ;;  %v589_v23 = vand.u32 2147483647, %v2148_v13  ;;  %v2158_v32 = vld [vmem:[%s2093_s18 + $0x38] sm:$0xff] }
  0x7e   : > { %v642_v14 = vmul.f32 1.442695, %v611_v8  ;;  %v640_v17 = vmul.f32 1.442695, %v610_v11  ;;  %v607_v22 = vsub.f32 0.0, %v591_v16  ;;  %v606_v25 = vsub.f32 0.0, %v590_v19 }
  0x7f   : > { %v638_v21 = vmul.f32 1.442695, %v609_v15  ;;  %v636_v24 = vmul.f32 1.442695, %v608_v18  ;;  %v605_v27 = vsub.f32 0.0, %v589_v23  ;;  %v579_v33 = vmax.f32 %v2126_v1, 0.0 }
  0x80   : > { %1385 = vpow2.f32 %v642_v14  ;;  %v634_v26 = vmul.f32 1.442695, %v607_v22  ;;  %v588_v28 = vand.u32 2147483647, %v2153_v20  ;;  %v632_v29 = vmul.f32 1.442695, %v606_v25 }
  0x81   : > { %1387 = vpow2.f32 %v640_v17  ;;  %v630_v30 = vmul.f32 1.442695, %v605_v27  ;;  %v578_v34 = vmax.f32 %v2130_v3, 0.0  ;;  %v577_v36 = vmax.f32 %v2134_v5, 0.0  ;;  %v2165_v39 = vld [vmem:[%s2093_s18 + $0x30] sm:$0xff] }
  0x82   : > { %1389 = vpow2.f32 %v638_v21  ;;  %v604_v31 = vsub.f32 0.0, %v588_v28  ;;  %v576_v37 = vmax.f32 %v2137_v6, 0.0  ;;  %v587_v43 = vand.u32 2147483647, %v2158_v32  ;;  %v546_v60 = vld [vmem:[%s2087_s3 + $0x70] sm:$0xff] }
  0x83   : > { %1391 = vpow2.f32 %v636_v24  ;;  %v575_v50 = vmax.f32 %v2140_v7, 0.0  ;;  %v586_v51 = vand.u32 2147483647, %v2165_v39 }
  0x84   : > { %1393 = vpow2.f32 %v634_v26  ;;  %v628_v38 = vmul.f32 1.442695, %v604_v31  ;;  %v2170_v58 = vsub.f32 0.0, %v587_v43  ;;  %v819_v31 = vld [vmem:[%s2095_s7 + $0x78] sm:$0xff] }
  0x85   : > { %1395 = vpow2.f32 %v632_v29  ;;  %v602_v23 = vsub.f32 0.0, %v586_v51 }
  0x86   : > { %v1386_v35 = vpop.eup %1385  ;;  %1397 = vpow2.f32 %v630_v30 }
  0x87   : > { %v1388_v40 = vpop.eup %1387  ;;  %v779_v41 = vadd.f32 1.0, %v1386_v35  ;;  %v782_v42 = vmul.f32 -0.5, %v1386_v35  ;;  %v785_v45 = vand.u32 2147483647, %v1386_v35  ;;  %1399 = vpow2.f32 %v628_v38 }
  0x88   : > { %v1390_v44 = vpop.eup %1389  ;;  %v770_v46 = vadd.f32 1.0, %v1388_v40  ;;  %v773_v47 = vmul.f32 -0.5, %v1388_v40  ;;  %v776_v56 = vand.u32 2147483647, %v1388_v40 }
  0x89   : > { %v1392_v48 = vpop.eup %1391  ;;  %1401 = vlog2.f32 %v779_v41  ;;  %v761_v49 = vadd.f32 1.0, %v1390_v44  ;;  %v783_v53 = vadd.f32 1.0, %v782_v42  ;;  %v764_v55 = vmul.f32 -0.5, %v1390_v44 }
  0x8a   : > { %v1394_v52 = vpop.eup %1393  ;;  %1403 = vlog2.f32 %v770_v46  ;;  %v774_v54 = vadd.f32 1.0, %v773_v47  ;;  %v752_v57 = vadd.f32 1.0, %v1392_v48  ;;  %vm2174_vm0 = vcmp.lt.f32.partialorder %v785_v45, 0.0004427343  ;;  %v2210_v47 = vld [vmem:[%s2093_s18 + $0x28] sm:$0xff] }
  0x8b   : > { %1405 = vlog2.f32 %v761_v49  ;;  %v2172_v59 = vpop.eup %1395  ;;  %v765_v61 = vadd.f32 1.0, %v764_v55  ;;  %v767_v62 = vand.u32 2147483647, %v1390_v44  ;;  %v755_v63 = vmul.f32 -0.5, %v1392_v48 }
  0x8c   : > { %v2178_v0 = vpop.eup %1397  ;;  %1407 = vlog2.f32 %v752_v57  ;;  %v758_v2 = vand.u32 2147483647, %v1392_v48  ;;  %v743_v4 = vadd.f32 1.0, %v1394_v52  ;;  %v746_v8 = vmul.f32 -0.5, %v1394_v52 }
  0x8d   : > { %v2180_v9 = vpop.eup %1399  ;;  %v784_v11 = vmul.f32 %v1386_v35, %v783_v53  ;;  %v775_v12 = vmul.f32 %v1388_v40, %v774_v54  ;;  %v756_v14 = vadd.f32 1.0, %v755_v63  ;;  %v749_v15 = vand.u32 2147483647, %v1394_v52 }
  0x8e   : > { %1409 = vlog2.f32 %v743_v4  ;;  %v747_v17 = vadd.f32 1.0, %v746_v8  ;;  %v734_v18 = vadd.f32 1.0, %v2172_v59  ;;  %v737_v19 = vmul.f32 -0.5, %v2172_v59 }
  0x8f   : > { %v1402_v16 = vpop.eup %1401  ;;  %vm2184_vm1 = vcmp.lt.f32.partialorder %v776_v56, 0.0004427343  ;;  %v766_v24 = vmul.f32 %v1390_v44, %v765_v61  ;;  %vm2188_vm2 = vcmp.lt.f32.partialorder %v767_v62, 0.0004427343  ;;  %v757_v28 = vmul.f32 %v1392_v48, %v756_v14  ;;  %v818_v44 = vld [vmem:[%s2095_s7 + $0x70] sm:$0xff]  ;;  %v547_v48 = vld [vmem:[%s2087_s3 + $0x78] sm:$0xff] }
  0x90   : > { %v1404_v21 = vpop.eup %1403  ;;  %v781_v22 = vmul.f32 0.6931472, %v1402_v16  ;;  %vm2192_vm3 = vcmp.lt.f32.partialorder %v758_v2, 0.0004427343  ;;  %1411 = vlog2.f32 %v734_v18  ;;  %v748_v38 = vmul.f32 %v1394_v52, %v747_v17  ;;  %v817_v56 = vld [vmem:[%s2095_s7 + $0x68] sm:$0xff] }
  0x91   : > { %v1406_v26 = vpop.eup %1405  ;;  %v772_v27 = vmul.f32 0.6931472, %v1404_v21  ;;  %vm2199_vm4 = vcmp.lt.f32.partialorder %v749_v15, 0.0004427343  ;;  %v738_v45 = vadd.f32 1.0, %v737_v19  ;;  %v725_v46 = vadd.f32 1.0, %v2178_v0 }
  0x92   : > { %v787_v30 = vsel %vm2174_vm0, %v784_v11, %v781_v22  ;;  %v763_v35 = vmul.f32 0.6931472, %v1406_v26  ;;  %v1408_v41 = vpop.eup %1407  ;;  %v728_v1 = vmul.f32 -0.5, %v2178_v0  ;;  %v740_v57 = vand.u32 2147483647, %v2172_v59  ;;  %v2232_v15 = vld [vmem:[%s2093_s18 + $0x20] sm:$0xff] }
  0x93   : > { %v803_v42 = vadd.f32 %v787_v30, %v579_v33  ;;  %v778_v43 = vsel %vm2184_vm1, %v775_v12, %v772_v27  ;;  %v754_v53 = vmul.f32 0.6931472, %v1408_v41  ;;  %1413 = vlog2.f32 %v725_v46  ;;  %v545_v17 = vld [vmem:[%s2087_s3 + $0x68] sm:$0xff]  ;;  %v816_v21 = vld [vmem:[%s2095_s7 + $0x60] sm:$0xff]  ;;  %v2260_v30 = vld [vmem:[%s2093_s18 + $0x18] sm:$0xff] }
  0x94   : > { %v802_v49 = vadd.f32 %v778_v43, %v578_v34  ;;  %v769_v52 = vsel %vm2188_vm2, %v766_v24, %v763_v35  ;;  %v1410_v33 = vpop.eup %1409  ;;  %v585_v62 = vand.u32 2147483647, %v2210_v47  ;;  %v574_v4 = vmax.f32 %v2144_v10, 0.0  ;;  %v544_v35 = vld [vmem:[%s2087_s3 + $0x60] sm:$0xff] }
  0x95   : > { %v835_v54 = vmul.f32 %v819_v31, %v803_v42  ;;  %v801_v55 = vadd.f32 %v769_v52, %v577_v36  ;;  %v760_v3 = vsel %vm2192_vm3, %v757_v28, %v754_v53  ;;  %v745_v34 = vmul.f32 0.6931472, %v1410_v33  ;;  %v815_v28 = vld [vmem:[%s2095_s7 + $0x58] sm:$0xff]  ;;  %v2263_v31 = vld [vmem:[%s2093_s18 + $0x10] sm:$0xff] }
  0x96   : > { %v834_v61 = vmul.f32 %v818_v44, %v802_v49  ;;  %v1412_v63 = vpop.eup %1411  ;;  %v729_v5 = vadd.f32 1.0, %v728_v1  ;;  %v731_v36 = vand.u32 2147483647, %v2178_v0  ;;  %v739_v14 = vmul.f32 %v2172_v59, %v738_v45  ;;  %v543_v42 = vld [vmem:[%s2087_s3 + $0x58] sm:$0xff]  ;;  %v814_v49 = vld [vmem:[%s2095_s7 + $0x50] sm:$0xff] }
  0x97   : > { %v851_v2 = vadd.f32 %v835_v54, %v547_v48  ;;  %v833_v8 = vmul.f32 %v817_v56, %v801_v55  ;;  %v751_v11 = vsel %vm2199_vm4, %v748_v38, %v745_v34  ;;  %v736_v12 = vmul.f32 0.6931472, %v1412_v63  ;;  %v2272_v48 = vld [vmem:[%s2093_s18 + $0x8] sm:$0xff] }
  0x98   : > { %v850_v16 = vadd.f32 %v834_v61, %v546_v60  ;;  %v800_v10 = vadd.f32 %v760_v3, %v576_v37  ;;  %vm2237_vm5 = vcmp.lt.f32.partialorder %v740_v57, 0.0004427343  ;;  %v626_v19 = vmul.f32 1.442695, %v2170_v58 }
  0x99   : > { %1185 = vmatpush.xpose.msra.mxu2 %v851_v2  ;;  %1186 = vmatpush.xpose.msra.mxu3 %v851_v2  ;;  %v716_v59 = vadd.f32 1.0, %v2180_v9  ;;  %v719_v22 = vmul.f32 -0.5, %v2180_v9  ;;  %v601_v24 = vsub.f32 0.0, %v585_v62  ;;  %v1414_v6 = vpop.eup %1413  ;;  %v799_v37 = vadd.f32 %v751_v11, %v575_v50  ;;  %v813_v62 = vld [vmem:[%s2095_s7 + $0x48] sm:$0xff] }
  0x9a   : > { %860 = vmatpush.xpose.msra.mxu0 %v851_v2  ;;  %1184 = vmatpush.xpose.msra.mxu1 %v851_v2  ;;  %v730_v25 = vmul.f32 %v2178_v0, %v729_v5  ;;  %vm2250_vm6 = vcmp.lt.f32.partialorder %v731_v36, 0.0004427343  ;;  %v584_v26 = vand.u32 2147483647, %v2232_v15  ;;  %v849_v27 = vadd.f32 %v833_v8, %v545_v17 }
  0x9b   : > { %v742_v51 = vsel %vm2237_vm5, %v739_v14, %v736_v12  ;;  %v727_v29 = vmul.f32 0.6931472, %v1414_v6  ;;  %1415 = vlog2.f32 %v716_v59  ;;  %v832_v7 = vmul.f32 %v816_v21, %v800_v10  ;;  %v541_v59 = vld [vmem:[%s2087_s3 + $0x48] sm:$0xff] }
  0x9c   : > { %v720_v50 = vadd.f32 1.0, %v719_v22  ;;  %v722_v0 = vand.u32 2147483647, %v2180_v9  ;;  %1417 = vpow2.f32 %v626_v19  ;;  %v573_v38 = vmax.f32 %v2148_v13, 0.0  ;;  %v2291_v19 = vld [vmem:[%s2093_s18] sm:$0xff] }
  0x9d   : > { %1188 = vmatpush.xpose.msra.mxu2 %v850_v16  ;;  %1189 = vmatpush.xpose.msra.mxu3 %v850_v16  ;;  %v572_v40 = vmax.f32 %v2153_v20, 0.0  ;;  %v624_v41 = vmul.f32 1.442695, %v602_v23  ;;  %v831_v43 = vmul.f32 %v815_v28, %v799_v37  ;;  %v798_v44 = vadd.f32 %v742_v51, %v574_v4 }
  0x9e   : > { %861 = vmatpush.xpose.msra.mxu0 %v850_v16  ;;  %1187 = vmatpush.xpose.msra.mxu1 %v850_v16  ;;  %v733_v45 = vsel %vm2250_vm6, %v730_v25, %v727_v29  ;;  %v622_v46 = vmul.f32 1.442695, %v601_v24  ;;  %v600_v52 = vsub.f32 0.0, %v584_v26  ;;  %v583_v53 = vand.u32 2147483647, %v2260_v30  ;;  %v542_v16 = vld [vmem:[%s2087_s3 + $0x50] sm:$0xff] }
  0x9f   : > { %1419 = vpow2.f32 %v624_v41  ;;  %v582_v1 = vand.u32 2147483647, %v2263_v31  ;;  %v848_v13 = vadd.f32 %v832_v7, %v544_v35  ;;  %v721_v20 = vmul.f32 %v2180_v9, %v720_v50 }
  0xa0   : > { %vm2278_vm7 = vcmp.lt.f32.partialorder %v722_v0, 0.0004427343  ;;  %1421 = vpow2.f32 %v622_v46  ;;  %v797_v55 = vadd.f32 %v733_v45, %v573_v38  ;;  %v620_v56 = vmul.f32 1.442695, %v600_v52 }
  0xa1   : > { %1191 = vmatpush.xpose.msra.mxu2 %v849_v27  ;;  %1192 = vmatpush.xpose.msra.mxu3 %v849_v27  ;;  %v1416_v54 = vpop.eup %1415  ;;  %v599_v57 = vsub.f32 0.0, %v583_v53  ;;  %v581_v60 = vand.u32 2147483647, %v2272_v48  ;;  %v847_v3 = vadd.f32 %v831_v43, %v543_v42  ;;  %v830_v34 = vmul.f32 %v814_v49, %v798_v44 }
  0xa2   : > { %862 = vmatpush.xpose.msra.mxu0 %v849_v27  ;;  %1190 = vmatpush.xpose.msra.mxu1 %v849_v27  ;;  %v1418_v61 = vpop.eup %1417  ;;  %v718_v63 = vmul.f32 0.6931472, %v1416_v54  ;;  %v571_v9 = vmax.f32 %v2158_v32, 0.0  ;;  %1423 = vpow2.f32 %v620_v56  ;;  %v598_v5 = vsub.f32 0.0, %v582_v1  ;;  %v812_v27 = vld [vmem:[%s2095_s7 + $0x40] sm:$0xff] }
  0xa3   : > { %v707_v2 = vadd.f32 1.0, %v1418_v61  ;;  %v710_v4 = vmul.f32 -0.5, %v1418_v61  ;;  %v570_v8 = vmax.f32 %v2165_v39, 0.0  ;;  %v569_v11 = vmax.f32 %v2210_v47, 0.0  ;;  %v540_v1 = vld [vmem:[%s2087_s3 + $0x40] sm:$0xff] }
  0xa4   : > { %v724_v36 = vsel %vm2278_vm7, %v721_v20, %v718_v63  ;;  %v618_v12 = vmul.f32 1.442695, %v599_v57  ;;  %v829_v17 = vmul.f32 %v813_v62, %v797_v55  ;;  %v597_v18 = vsub.f32 0.0, %v581_v60  ;;  %v811_v57 = vld [vmem:[%s2095_s7 + $0x38] sm:$0xff] }
  0xa5   : > { %1194 = vmatpush.xpose.msra.mxu2 %v848_v13  ;;  %1195 = vmatpush.xpose.msra.mxu3 %v848_v13  ;;  %v1420_v14 = vpop.eup %1419  ;;  %1425 = vlog2.f32 %v707_v2  ;;  %v711_v10 = vadd.f32 1.0, %v710_v4  ;;  %v713_v22 = vand.u32 2147483647, %v1418_v61  ;;  %v796_v6 = vadd.f32 %v724_v36, %v572_v40 }
  0xa6   : > { %863 = vmatpush.xpose.msra.mxu0 %v848_v13  ;;  %1193 = vmatpush.xpose.msra.mxu1 %v848_v13  ;;  %v1422_v21 = vpop.eup %1421  ;;  %v698_v23 = vadd.f32 1.0, %v1420_v14  ;;  %v701_v24 = vmul.f32 -0.5, %v1420_v14  ;;  %1427 = vpow2.f32 %v618_v12  ;;  %v616_v58 = vmul.f32 1.442695, %v598_v5 }
  0xa7   : > { %v689_v37 = vadd.f32 1.0, %v1422_v21  ;;  %v692_v25 = vmul.f32 -0.5, %v1422_v21  ;;  %v846_v26 = vadd.f32 %v830_v34, %v542_v16  ;;  %v704_v28 = vand.u32 2147483647, %v1420_v14  ;;  %v810_v16 = vld [vmem:[%s2095_s7 + $0x30] sm:$0xff] }
  0xa8   : > { %1429 = vlog2.f32 %v698_v23  ;;  %v580_v51 = vand.u32 2147483647, %v2291_v19  ;;  %v1424_v29 = vpop.eup %1423  ;;  %v845_v7 = vadd.f32 %v829_v17, %v541_v59  ;;  %v712_v50 = vmul.f32 %v1418_v61, %v711_v10 }
  0xa9   : > { %1197 = vmatpush.xpose.msra.mxu2 %v847_v3  ;;  %1198 = vmatpush.xpose.msra.mxu3 %v847_v3  ;;  %v702_v0 = vadd.f32 1.0, %v701_v24  ;;  %1431 = vlog2.f32 %v689_v37  ;;  %v693_v35 = vadd.f32 1.0, %v692_v25  ;;  %v695_v38 = vand.u32 2147483647, %v1422_v21 }
  0xaa   : > { %864 = vmatpush.xpose.msra.mxu0 %v847_v3  ;;  %1196 = vmatpush.xpose.msra.mxu1 %v847_v3  ;;  %v680_v40 = vadd.f32 1.0, %v1424_v29  ;;  %v683_v41 = vmul.f32 -0.5, %v1424_v29  ;;  %v828_v43 = vmul.f32 %v812_v27, %v796_v6  ;;  %vm2296_vm8 = vcmp.lt.f32.partialorder %v713_v22, 0.0004427343  ;;  %v538_v27 = vld [vmem:[%s2087_s3 + $0x30] sm:$0xff] }
  0xab   : > { %v1426_v42 = vpop.eup %1425  ;;  %1433 = vpow2.f32 %v616_v58  ;;  %v614_v45 = vmul.f32 1.442695, %v597_v18  ;;  %vm2302_vm9 = vcmp.lt.f32.partialorder %v704_v28, 0.0004427343  ;;  %v686_v53 = vand.u32 2147483647, %v1424_v29 }
  0xac   : > { %v2300_v46 = vpop.eup %1427  ;;  %v709_v49 = vmul.f32 0.6931472, %v1426_v42  ;;  %1435 = vlog2.f32 %v680_v40  ;;  %v703_v13 = vmul.f32 %v1420_v14, %v702_v0  ;;  %v684_v20 = vadd.f32 1.0, %v683_v41  ;;  %v539_v14 = vld [vmem:[%s2087_s3 + $0x38] sm:$0xff]  ;;  %v809_v28 = vld [vmem:[%s2095_s7 + $0x28] sm:$0xff] }
  0xad   : > { %1200 = vmatpush.xpose.msra.mxu2 %v846_v26  ;;  %1201 = vmatpush.xpose.msra.mxu3 %v846_v26  ;;  %v671_v33 = vadd.f32 1.0, %v2300_v46  ;;  %v674_v54 = vmul.f32 -0.5, %v2300_v46  ;;  %v694_v60 = vmul.f32 %v1422_v21, %v693_v35  ;;  %vm2312_vm10 = vcmp.lt.f32.partialorder %v695_v38, 0.0004427343  ;;  %v537_v42 = vld [vmem:[%s2087_s3 + $0x28] sm:$0xff] }
  0xae   : > { %865 = vmatpush.xpose.msra.mxu0 %v846_v26  ;;  %1199 = vmatpush.xpose.msra.mxu1 %v846_v26  ;;  %v1430_v55 = vpop.eup %1429  ;;  %v715_v56 = vsel %vm2296_vm8, %v712_v50, %v709_v49  ;;  %1437 = vpow2.f32 %v614_v45  ;;  %v596_v63 = vsub.f32 0.0, %v580_v51  ;;  %v844_v2 = vadd.f32 %v828_v43, %v540_v1  ;;  %v808_v43 = vld [vmem:[%s2095_s7 + $0x20] sm:$0xff] }
  0xaf   : > { %v1432_v3 = vpop.eup %1431  ;;  %v795_v34 = vadd.f32 %v715_v56, %v571_v9  ;;  %v700_v62 = vmul.f32 0.6931472, %v1430_v55  ;;  %1439 = vlog2.f32 %v671_v33  ;;  %vm2318_vm11 = vcmp.lt.f32.partialorder %v686_v53, 0.0004427343  ;;  %v536_v55 = vld [vmem:[%s2087_s3 + $0x20] sm:$0xff]  ;;  %v807_v56 = vld [vmem:[%s2095_s7 + $0x18] sm:$0xff] }
  0xb0   : > { %v691_v4 = vmul.f32 0.6931472, %v1432_v3  ;;  %v677_v36 = vand.u32 2147483647, %v2300_v46  ;;  %v685_v17 = vmul.f32 %v1424_v29, %v684_v20  ;;  %v675_v10 = vadd.f32 1.0, %v674_v54 }
  0xb1   : > { %1203 = vmatpush.xpose.msra.mxu2 %v845_v7  ;;  %1204 = vmatpush.xpose.msra.mxu3 %v845_v7  ;;  %v1434_v12 = vpop.eup %1433  ;;  %v827_v32 = vmul.f32 %v811_v57, %v795_v34  ;;  %v706_v9 = vsel %vm2302_vm9, %v703_v13, %v700_v62  ;;  %v568_v24 = vmax.f32 %v2232_v15, 0.0  ;;  %v612_v37 = vmul.f32 1.442695, %v596_v63 }
  0xb2   : > { %866 = vmatpush.xpose.msra.mxu0 %v845_v7  ;;  %1202 = vmatpush.xpose.msra.mxu1 %v845_v7  ;;  %v1436_v18 = vpop.eup %1435  ;;  %v794_v21 = vadd.f32 %v706_v9, %v570_v8  ;;  %v697_v59 = vsel %vm2312_vm10, %v694_v60, %v691_v4  ;;  %v662_v22 = vadd.f32 1.0, %v1434_v12  ;;  %v665_v23 = vmul.f32 -0.5, %v1434_v12 }
  0xb3   : > { %v682_v6 = vmul.f32 0.6931472, %v1436_v18  ;;  %v843_v58 = vadd.f32 %v827_v32, %v539_v14  ;;  %v793_v39 = vadd.f32 %v697_v59, %v569_v11  ;;  %v676_v15 = vmul.f32 %v2300_v46, %v675_v10  ;;  %v805_v18 = vld [vmem:[%s2095_s7 + $0x8] sm:$0xff] }
  0xb4   : > { %v1438_v25 = vpop.eup %1437  ;;  %v826_v26 = vmul.f32 %v810_v16, %v794_v21  ;;  %1441 = vlog2.f32 %v662_v22  ;;  %v666_v29 = vadd.f32 1.0, %v665_v23  ;;  %vm2339_vm12 = vcmp.lt.f32.partialorder %v677_v36, 0.0004427343  ;;  %v535_v36 = vld [vmem:[%s2087_s3 + $0x18] sm:$0xff] }
  0xb5   : > { %1206 = vmatpush.xpose.msra.mxu2 %v844_v2  ;;  %1207 = vmatpush.xpose.msra.mxu3 %v844_v2  ;;  %v1440_v8 = vpop.eup %1439  ;;  %v688_v51 = vsel %vm2318_vm11, %v685_v17, %v682_v6  ;;  %v653_v7 = vadd.f32 1.0, %v1438_v25  ;;  %v668_v47 = vand.u32 2147483647, %v1434_v12  ;;  %v567_v11 = vmax.f32 %v2260_v30, 0.0 }
  0xb6   : > { %867 = vmatpush.xpose.msra.mxu0 %v844_v2  ;;  %1205 = vmatpush.xpose.msra.mxu1 %v844_v2  ;;  %v673_v50 = vmul.f32 0.6931472, %v1440_v8  ;;  %v656_v35 = vmul.f32 -0.5, %v1438_v25  ;;  %v842_v38 = vadd.f32 %v826_v26, %v538_v27  ;;  %v825_v40 = vmul.f32 %v809_v28, %v793_v39  ;;  %v854_v28 = vld [vmem:[%s2079_s10 + $0x10] sm:$0xff] }
  0xb7   : > { %1443 = vlog2.f32 %v653_v7  ;;  %v792_v41 = vadd.f32 %v688_v51, %v568_v24  ;;  %v667_v45 = vmul.f32 %v1434_v12, %v666_v29  ;;  %vm2348_vm13 = vcmp.lt.f32.partialorder %v668_v47, 0.0004427343  ;;  %v806_v12 = vld [vmem:[%s2095_s7 + $0x10] sm:$0xff]  ;;  %v855_v51 = vld [vmem:[%s2079_s10 + $0x18] sm:$0xff]  ;;  %v853_v29 = vld [vmem:[%s2079_s10 + $0x8] sm:$0xff] }
  0xb8   : > { %1445 = vpow2.f32 %v612_v37  ;;  %v679_v44 = vsel %vm2339_vm12, %v676_v15, %v673_v50  ;;  %v657_v46 = vadd.f32 1.0, %v656_v35  ;;  %v659_v52 = vand.u32 2147483647, %v1438_v25  ;;  %v533_v37 = vld [vmem:[%s2087_s3 + $0x8] sm:$0xff]  ;;  %v852_v15 = vld [vmem:[%s2079_s10] sm:$0xff]  ;;  %v856_v7 = vld [vmem:[#allocation2 + $0x10] sm:$0xff] }
  0xb9   : > { %1209 = vmatpush.xpose.msra.mxu2 %v843_v58  ;;  %1210 = vmatpush.xpose.msra.mxu3 %v843_v58  ;;  %v841_v1 = vadd.f32 %v825_v40, %v537_v42  ;;  %v824_v13 = vmul.f32 %v808_v43, %v792_v41  ;;  %v791_v20 = vadd.f32 %v679_v44, %v567_v11  ;;  %v566_v33 = vmax.f32 %v2263_v31, 0.0  ;;  %v857_v50 = vld [vmem:[#allocation2] sm:$0xff]  ;;  %v859_v40 = vld [vmem:[#allocation2 + $0x8] sm:$0xff]  ;;  %s2554_s10 = sld [smem:[#allocation22_spill]] }
  0xba   : > { %868 = vmatpush.xpose.msra.mxu0 %v843_v58  ;;  %1208 = vmatpush.xpose.msra.mxu1 %v843_v58  ;;  %v1442_v30 = vpop.eup %1441  ;;  %v658_v60 = vmul.f32 %v1438_v25, %v657_v46  ;;  %vm2357_vm14 = vcmp.lt.f32.partialorder %v659_v52, 0.0004427343  ;;  %v565_v5 = vmax.f32 %v2272_v48, 0.0  ;;  %v534_v48 = vld [vmem:[%s2087_s3 + $0x10] sm:$0xff]  ;;  %v564_v22 = vmax.f32 %v2291_v19, 0.0  ;;  %v804_v58 = vld [vmem:[%s2095_s7] sm:$0xff] }
  0xbb   : > { %v664_v53 = vmul.f32 0.6931472, %v1442_v30  ;;  %v840_v31 = vadd.f32 %v824_v13, %v536_v55  ;;  %v823_v2 = vmul.f32 %v807_v56, %v791_v20  ;;  %v532_v19 = vld [vmem:[%s2087_s3] sm:$0xff] }
  0xbd   : > { %1212 = vmatpush.xpose.msra.mxu2 %v842_v38  ;;  %1213 = vmatpush.xpose.msra.mxu3 %v842_v38  ;;  %v1444_v54 = vpop.eup %1443  ;;  %v670_v57 = vsel %vm2348_vm13, %v667_v45, %v664_v53  ;;  %v839_v16 = vadd.f32 %v823_v2, %v535_v36 }
  0xbe   : > { %869 = vmatpush.xpose.msra.mxu0 %v842_v38  ;;  %1211 = vmatpush.xpose.msra.mxu1 %v842_v38  ;;  %v1446_v61 = vpop.eup %1445  ;;  %v655_v3 = vmul.f32 0.6931472, %v1444_v54  ;;  %v790_v4 = vadd.f32 %v670_v57, %v566_v33  ;;  %v858_v38 = vld [vmem:[#allocation2 + $0x18] sm:$0xff] }
  0xbf   : > { %v644_v62 = vadd.f32 1.0, %v1446_v61  ;;  %v647_v63 = vmul.f32 -0.5, %v1446_v61  ;;  %v650_v9 = vand.u32 2147483647, %v1446_v61  ;;  %p1176_p8 = scmp.ne.s32.totalorder %s2554_s10, 1 }
  0xc0   : > { %v661_v14 = vsel %vm2357_vm14, %v658_v60, %v655_v3  ;;  %v822_v17 = vmul.f32 %v806_v12, %v790_v4 }
  0xc1   : > { %1215 = vmatpush.xpose.msra.mxu2 %v841_v1  ;;  %1216 = vmatpush.xpose.msra.mxu3 %v841_v1  ;;  %1447 = vlog2.f32 %v644_v62  ;;  %v648_v32 = vadd.f32 1.0, %v647_v63  ;;  %v789_v10 = vadd.f32 %v661_v14, %v565_v5  ;;  %vm651_vm15 = vcmp.lt.f32.partialorder %v650_v9, 0.0004427343 }
  0xc2   : > { %870 = vmatpush.xpose.msra.mxu0 %v841_v1  ;;  %1214 = vmatpush.xpose.msra.mxu1 %v841_v1  ;;  %v838_v23 = vadd.f32 %v822_v17, %v534_v48 }
  0xc3   : > { %v649_v21 = vmul.f32 %v1446_v61, %v648_v32  ;;  %v821_v24 = vmul.f32 %v805_v18, %v789_v10 }
  0xc5   : > { %1218 = vmatpush.xpose.msra.mxu2 %v840_v31  ;;  %1219 = vmatpush.xpose.msra.mxu3 %v840_v31  ;;  %v837_v39 = vadd.f32 %v821_v24, %v533_v37 }
  0xc6   : > { %871 = vmatpush.xpose.msra.mxu0 %v840_v31  ;;  %1217 = vmatpush.xpose.msra.mxu1 %v840_v31 }
  0xc7   : > { %v1448_v59 = vpop.eup %1447 }
  0xc8   : > { %v646_v6 = vmul.f32 0.6931472, %v1448_v59 }
  0xc9   : > { %1221 = vmatpush.xpose.msra.mxu2 %v839_v16  ;;  %1222 = vmatpush.xpose.msra.mxu3 %v839_v16 }
  0xca   : > { %872 = vmatpush.xpose.msra.mxu0 %v839_v16  ;;  %1220 = vmatpush.xpose.msra.mxu1 %v839_v16  ;;  %v652_v25 = vsel %vm651_vm15, %v649_v21, %v646_v6 }
  0xcb   : > { %v788_v26 = vadd.f32 %v652_v25, %v564_v22 }
  0xcd   : > { %1224 = vmatpush.xpose.msra.mxu2 %v838_v23  ;;  %1225 = vmatpush.xpose.msra.mxu3 %v838_v23  ;;  %v820_v8 = vmul.f32 %v804_v58, %v788_v26 }
  0xce   : > { %873 = vmatpush.xpose.msra.mxu0 %v838_v23  ;;  %1223 = vmatpush.xpose.msra.mxu1 %v838_v23 }
  0xcf   : > { %v836_v27 = vadd.f32 %v820_v8, %v532_v19 }
  0xd1   : > { %1227 = vmatpush.xpose.msra.mxu2 %v837_v39  ;;  %1228 = vmatpush.xpose.msra.mxu3 %v837_v39 }
  0xd2   : > { %874 = vmatpush.xpose.msra.mxu0 %v837_v39  ;;  %1226 = vmatpush.xpose.msra.mxu1 %v837_v39 }
  0xd5   : > { %1230 = vmatpush.xpose.msra.mxu2 %v836_v27  ;;  %1231 = vmatpush.xpose.msra.mxu3 %v836_v27 }
  0xd6   : > { %875 = vmatpush.xpose.msra.mxu0 %v836_v27  ;;  %1229 = vmatpush.xpose.msra.mxu1 %v836_v27 }
  0xd8   : > { %882 = vmatmul.f32.vlgmr.msra.gmra.mxu2 %v854_v28  ;;  %885 = vmatmul.f32.vlgmr.msra.gmra.mxu3 %v855_v51 }
  0xd9   : > { %876 = vmatmul.f32.vlgmr.msra.gmra.mxu0 %v852_v15  ;;  %879 = vmatmul.f32.vlgmr.msra.gmra.mxu1 %v853_v29 }
 0x156   : > { %v877_v0 = vpop.f32.mrf.mxu0  ;;  %v880_v47 = vpop.f32.mrf.mxu1 }
 0x157   : > { %v889_v11 = vadd.f32 %v877_v0, %v856_v7  ;;  %v890_v35 = vadd.f32 %v880_v47, %v857_v50 }
 0x159   : > { %893 = vst [vmem:[#allocation2 + $0x10] sm:$0xff] %v889_v11 }
 0x15a   : > { %894 = vst [vmem:[#allocation2] sm:$0xff] %v890_v35 }
 0x15b   : > { %v883_v41 = vpop.f32.mrf.mxu2  ;;  %v886_v42 = vpop.f32.mrf.mxu3  ;;  %900 = sbr.rel (%p1176_p8) target bundleno = 392 (0x188), region = 76 }
 0x15c   : > { %v891_v43 = vadd.f32 %v883_v41, %v858_v38  ;;  %v892_v44 = vadd.f32 %v886_v42, %v859_v40 }
 0x15e   : > { %895 = vst [vmem:[#allocation2 + $0x18] sm:$0xff] %v891_v43 }
 0x15f   : > { %896 = vst [vmem:[#allocation2 + $0x8] sm:$0xff] %v892_v44 }
 0x160   : > { %v902_v45 = vld [vmem:[%s522_s24] sm:$0x1]  ;;  %v921_v63 = vld [vmem:[#allocation2 + $0x10] sm:$0xff] }
 0x161   : > { %v904_v46 = vand.u32 2147483647, %v902_v45  ;;  %v903_v55 = vmax.f32 %v902_v45, 0.0  ;;  %v918_v60 = vld [vmem:[%s456_s5] sm:$0x1] }
 0x162   : > { %v901_v3 = vld [vmem:[%s519_s0] sm:$0x1] }
 0x163   : > { %v905_v30 = vsub.f32 0.0, %v904_v46  ;;  %v922_v31 = vld [vmem:[#allocation2] sm:$0xff] }
 0x165   : > { %v906_v49 = vmul.f32 1.442695, %v905_v30  ;;  %v923_v2 = vld [vmem:[#allocation2 + $0x18] sm:$0xff] }
 0x166   : > { %v924_v5 = vld [vmem:[#allocation2 + $0x8] sm:$0xff] }
 0x167   : > { %1449 = vpow2.f32 %v906_v49 }
 0x16d   : > { %v1450_v52 = vpop.eup %1449 }
 0x16e   : > { %v908_v53 = vadd.f32 1.0, %v1450_v52  ;;  %v911_v1 = vmul.f32 -0.5, %v1450_v52  ;;  %v914_v20 = vand.u32 2147483647, %v1450_v52 }
 0x170   : > { %1451 = vlog2.f32 %v908_v53  ;;  %v912_v13 = vadd.f32 1.0, %v911_v1  ;;  %vm915_vm0 = vcmp.lt.f32.partialorder %v914_v20, 0.0004427343 }
 0x172   : > { %v913_v33 = vmul.f32 %v1450_v52, %v912_v13 }
 0x176   : > { %v1452_v54 = vpop.eup %1451 }
 0x177   : > { %v910_v56 = vmul.f32 0.6931472, %v1452_v54 }
 0x179   : > { %v916_v57 = vsel %vm915_vm0, %v913_v33, %v910_v56 }
 0x17a   : > { %v917_v61 = vadd.f32 %v916_v57, %v903_v55 }
 0x17c   : > { %v919_v34 = vmul.f32 %v918_v60, %v917_v61 }
 0x17e   : > { %v920_v62 = vadd.f32 %v919_v34, %v901_v3 }
 0x180   : > { %v926_v4 = vperm.slane %v920_v62, 0 }
 0x182   : > { %v928_v36 = vadd.f32 %v926_v4, %v921_v63  ;;  %v929_v12 = vadd.f32 %v926_v4, %v922_v31  ;;  %v930_v14 = vadd.f32 %v926_v4, %v923_v2  ;;  %v931_v32 = vadd.f32 %v926_v4, %v924_v5 }
 0x184   : > { %932 = vst [vmem:[%s2122_s6] sm:$0xff] %v928_v36 }
 0x185   : > { %933 = vst [vmem:[%s2122_s6 + $0x8] sm:$0xff] %v929_v12 }
 0x186   : > { %934 = vst [vmem:[%s2122_s6 + $0x10] sm:$0xff] %v930_v14 }
 0x187   : > { %935 = vst [vmem:[%s2122_s6 + $0x18] sm:$0xff] %v931_v32 }
 0x188 PF: > { %s2557_s5 = sld [smem:[#allocation23_spill]]  ;;  %s951_s19 = sshll.u32 %s2122_s6, 4  ;;  %s952_s19 = int_to_ptr.vmem [resolvable:$true] %s951_s19 }
 0x189   : > { %s2558_s0 = sld [smem:[#allocation33_spill]]  ;;  %s937_s24 = scalar_lea.sflag [#allocation5], %s2102_s4 }
 0x18e   : > { %s1178_s21 = sshll.u32 %s2557_s5, 3 }
 0x18f   : > { %s950_s30 = scalar_lea.hbm %s2558_s0, %s1178_s21  ;;  %s1623_s20 = scalar_lea.hbm %s2558_s0, 64 }
 0x190   : > { %s953_s28 = sshll.u32 %s950_s30, 4  ;;  %s954_s28 = int_to_ptr.hbm [resolvable:$true] %s953_s28 }
 0x191   : > { %s1617_s12 = sshra.s32 %s954_s28, 4  ;;  %s1618_s12 = int_to_ptr.hbm [resolvable:$true] %s1617_s12 }
 0x192   : > { %s1619_s10 = scalar_lea.hbm %s1618_s12, 32  ;;  %p1624_p12 = scmp.lt.s32.totalorder %s1618_s12, %s2558_s0 }
 0x193   : > { %p1620_p1 = scmp.ne.s32.totalorder %s1618_s12, %s1619_s10  ;;  %p1625_p3 = scmp.lt.s32.totalorder %s1623_s20, %s1619_s10 }
 0x195   : > { %p1621_p9 = pnand %p1620_p1, %p2055_p0  ;;  %p1626_p13 = por %p1625_p3, %p1624_p12 }
 0x197   : > { %p1622_p11 = pneg %p1621_p9 }
 0x199   : > { %p1627_p2 = pnand %p1626_p13, %p1622_p11 }
 0x19b   : > { %1630 = shalt.err (!%p1627_p2)
}
 0x19c   : > { %s1767_s4 = smov 128   ;;  %s1768_s6 = smov 256  }
 0x19d   : > { %s1769_s16 = smov 8  }
 0x19e   : > { %1242 = dma.vmem_to_hbm [thread:$0]  (%p2055_p0), %s952_s19, 512, %s954_s28, %s937_s24, %s1767_s4, %s1768_s6, %s1769_s16  }
 0x19f PF: > { %s2559_s5 = sld [smem:[#allocation18_spill]]  ;;  %p1265_p6 = scmp.ge.s32.totalorder %s1761_s14, 2 }
 0x1a1   : > { %p1261_p7 = pnand %p1265_p6, %p2067_p4 }
 0x1a3   : > { %p1262_p5 = pneg %p1261_p7 }
 0x1a5   : > { %s968_s21 = sand.u32 1, %s2559_s5  }
 0x1a6   : > { %s969_s15 = scalar_lea.sflag [#allocation5], %s968_s21 }
 0x1a7   : > { %1704 = dma.done.wait (%p1262_p5), %s969_s15, 512  }
 0x1a8   : > { %1706 = vsyncadd (%p1262_p5), %s969_s15, 4294966784  ;;  %s29_s14 = sadd.s32 1, %s1761_s14   ;;  %s2561_s11 = sld [smem:[#allocation20_spill]] }
 0x1a9   : > { %p2414_p10 = scmp.ge.s32.totalorder %s29_s14, 6   ;;  %s2562_s28 = sld [smem:[#allocation21_spill]] }
 0x1aa   : > { %s2563_s19 = sld [smem:[#allocation26_spill]]  ;;  %s2566_s24 = smov %s1713_s25 }
 0x1ab   : > { %s2564_s10 = sld [smem:[#allocation24_spill]]  ;;  %s2567_s25 = smov %s1717_s26 }
 0x1ac   : > { %s2565_s12 = sld [smem:[#allocation25_spill]]  ;;  %s2568_s26 = smov %s2045_s27 }
 0x1ad   : > { %s2570_s29 = smov %s2583_s22  ;;  %s2571_s30 = smov %s1737_s8 }
 0x1ae   : > { %s2569_s27 = smov %s2561_s11  ;;  %s2572_s8 = smov %s1741_s9 }
 0x1af   : > { %s2574_s11 = smov %s1757_s13  ;;  %s2575_s13 = smov %s2581_s1 }
 0x1b0   : > { %s2573_s9 = smov %s2563_s19  ;;  %28 = sbr.rel (!%p2414_p10) target bundleno = 22 (0x16), region = 155 }
 0x1b5   :  { %975 = vsyncpa [#allocation4], 1 }
 0x1b6   :  { %977 = vsyncpa [#allocation4 + $0x1], 1 }
 0x1b7   :  { %978 = vsyncpa [#allocation7], 1 }
 0x1b8   :  { %980 = vsyncpa [#allocation7 + $0x1], 1 }
 0x1b9   :  { %981 = vsyncpa [#allocation10], 1 }
 0x1ba   :  { %983 = vsyncpa [#allocation10 + $0x1], 1 }
 0x1bb   :  { %984 = vsyncpa [#allocation5], 1 }
 0x1bc   :  { %986 = vsyncpa [#allocation5 + $0x1], 1 }

</bundles_post_ra>
